<compile_context>
chip_gen: v5e
topology: v5e:2x2
jax: 0.10.0
libtpu: 0.0.40
codegen_flags: <defaults>
</compile_context>

<pallas_src>
import jax
import jax.numpy as jnp
from jax import lax
from jax.experimental import pallas as pl
from jax.experimental.pallas import tpu as pltpu


# --------------------------------------------------------------------------
# Kernel 1: per-batch prototypes  (grid = (B,))
# --------------------------------------------------------------------------
def _proto_kernel(sup_reps_ref, sup_tgt_ref, proto_ref):
    """proto[d, t] = (sum_{s,l} reps[s,l,d]*tgt[s,l,t]) / (count_t + 1e-4) / S.

    The extra 1/S folds the query-side mean-over-support into the prototype
    so the hot kernel only needs a sum over S."""
    reps = sup_reps_ref[0].astype(jnp.float32)        # (S, Ls, D)
    tgt = sup_tgt_ref[0].astype(jnp.float32)          # (S, Ls, Tp)
    S, Ls, D = reps.shape
    Tp = tgt.shape[-1]
    reps2 = reps.reshape(S * Ls, D)
    tgt2 = tgt.reshape(S * Ls, Tp)
    # sum_reps[d, t] = sum_{s,l} reps[s,l,d] * tgt[s,l,t]
    sum_dt = lax.dot_general(reps2, tgt2, (((0,), (0,)), ((), ())),
                             preferred_element_type=jnp.float32)     # (D, Tp)
    # remove_0: + 0.0001 (matches PyTorch)
    tag_count = jnp.sum(tgt2, axis=0, keepdims=True) + 0.0001        # (1, Tp)
    scale = pl.reciprocal(tag_count, approx=False) * (1.0 / S)
    proto_ref[0] = (sum_dt * scale).astype(proto_ref.dtype)


# --------------------------------------------------------------------------
# Kernel 2: similarity  (grid = (B, QB), both axes parallel)
# --------------------------------------------------------------------------
def _sim_kernel(test_ref, proto_ref, out_ref):
    """test block (Qt, S, Lt, D); proto block (1, D, Tp) constant across qb;
    out block (Qt, Lt, T) stored at the true tag width (masked lane stores)."""
    Qt, S, Lt, D = test_ref.shape
    Tp = proto_ref.shape[-1]
    T = out_ref.shape[-1]
    # sum over support axis (1/S already folded into the prototype)
    t = jnp.sum(test_ref[...].astype(jnp.float32), axis=1)           # (Qt, Lt, D)
    t2 = t.reshape(Qt * Lt, D).astype(proto_ref.dtype)
    sim = lax.dot_general(t2, proto_ref[0], (((1,), (0,)), ((), ())),
                          preferred_element_type=jnp.float32)        # (Qt*Lt, Tp)
    out_ref[...] = sim.reshape(Qt, Lt, Tp)[:, :, :T].astype(out_ref.dtype)


# --------------------------------------------------------------------------
# Wrapper helpers
# --------------------------------------------------------------------------
def _vmem_capacity_bytes():
    try:
        cap = getattr(pltpu.get_tpu_info(), "vmem_capacity_bytes", None)
        if cap:
            return int(cap)
    except Exception:
        pass
    return 64 * 1024 * 1024      # conservative (v7x-sized) fallback


def _choose_qt(Q, S, Lt, D, T, Tp, in_itemsize, budget_bytes):
    """Queries per grid step: targets ~512 matmul rows, keeps the
    double-buffered blocks within the VMEM budget, and prefers an exact
    divisor of Q (within 2x of the target) so no query padding is needed."""
    fixed = 2 * D * Tp * in_itemsize                           # proto (double-buffered)
    per_q = 2 * S * Lt * D * in_itemsize + 2 * Lt * T * 4      # test-in + f32-out
    qt_vmem = max(1, (budget_bytes - fixed) // per_q)
    qt_rows = max(1, -(-512 // Lt))                            # Qt*Lt ~ 512 rows
    qt = int(min(Q, qt_vmem, qt_rows))
    for cand in range(qt, max(qt // 2, 1) - 1, -1):
        if Q % cand == 0:
            return cand
    return qt                                                  # pad Q up instead


# --------------------------------------------------------------------------
# Public wrapper (forward pass)
# --------------------------------------------------------------------------
def prototype_similarity_scorer(test_reps, support_reps, test_output_mask,
                                support_output_mask, support_targets,
                                label_reps=None, compute_dtype=jnp.bfloat16):
    """Returns similarity of shape (B*Q, test_seq_len, num_tags), float32.

    compute_dtype is the dtype of the dominant HBM stream (test_reps) and of
    the MXU operands; accumulation is always float32.  Callers should pass
    test_reps already in bf16 to avoid the wrapper-side cast pass."""
    del test_output_mask, support_output_mask, label_reps  # unused, as in torch
    N, S, Lt, D = test_reps.shape
    B, S2, Ls, D2 = support_reps.shape
    assert S == S2 and D == D2
    T = support_targets.shape[-1]
    assert N % B == 0
    Q = N // B

    # --- pad num_tags to a multiple of 128 (lane-dense); zero columns inert ---
    Tp = max(128, ((T + 127) // 128) * 128)
    if Tp != T:
        support_targets = jnp.pad(support_targets,
                                  ((0, 0), (0, 0), (0, 0), (0, Tp - T)))
    # --- pad support_seq_len to a sublane multiple of 8; zero rows inert ---
    pad_ls = (-Ls) % 8
    if pad_ls:
        support_reps = jnp.pad(support_reps,
                               ((0, 0), (0, 0), (0, pad_ls), (0, 0)))
        support_targets = jnp.pad(support_targets,
                                  ((0, 0), (0, 0), (0, pad_ls), (0, 0)))
        Ls += pad_ls

    # --- generation-aware VMEM budgeting (v5e/v6e: 128 MiB, v7x: 64 MiB) ---
    vmem_cap = _vmem_capacity_bytes()
    budget = int(vmem_cap * 0.65)          # ~83 MiB / ~42 MiB for block sizing
    vmem_limit = int(vmem_cap * 0.75)      # ~96 MiB / ~48 MiB scoped limit

    in_itemsize = jnp.dtype(compute_dtype).itemsize
    pad_lt = (-Lt) % 8
    Lt_p = Lt + pad_lt
    Qt = _choose_qt(Q, S, Lt_p, D, T, Tp, in_itemsize, budget)
    QB = -(-Q // Qt)
    Qp = QB * Qt

    # --- step 1: per-batch prototypes (B, D, Tp) in compute_dtype ---
    proto = pl.pallas_call(
        _proto_kernel,
        out_shape=jax.ShapeDtypeStruct((B, D, Tp), compute_dtype),
        grid_spec=pltpu.PrefetchScalarGridSpec(
            num_scalar_prefetch=0,
            grid=(B,),
            in_specs=[pl.BlockSpec((1, S, Ls, D), lambda b: (b, 0, 0, 0)),
                      pl.BlockSpec((1, S, Ls, Tp), lambda b: (b, 0, 0, 0))],
            out_specs=pl.BlockSpec((1, D, Tp), lambda b: (b, 0, 0)),
        ),
        compiler_params=pltpu.CompilerParams(
            dimension_semantics=("parallel",),
            vmem_limit_bytes=vmem_limit),
    )(support_reps, support_targets)

    # --- prepare the query stream: compute_dtype; pad Q/Lt only if needed ---
    test_c = test_reps.astype(compute_dtype)
    if Qp != Q or pad_lt:
        test_c = test_c.reshape(B, Q, S, Lt, D)
        test_c = jnp.pad(test_c,
                         ((0, 0), (0, Qp - Q), (0, 0), (0, pad_lt), (0, 0)))
        test_c = test_c.reshape(B * Qp, S, Lt_p, D)

    # --- step 2: similarity; both grid axes parallel (megacore-friendly) ---
    out = pl.pallas_call(
        _sim_kernel,
        out_shape=jax.ShapeDtypeStruct((B * Qp, Lt_p, T), jnp.float32),
        grid_spec=pltpu.PrefetchScalarGridSpec(
            num_scalar_prefetch=0,
            grid=(B, QB),
            in_specs=[
                # Qt queries per step.
                pl.BlockSpec((Qt, S, Lt_p, D),
                             lambda b, qb: (b * QB + qb, 0, 0, 0)),
                # Constant across qb -> re-DMA'd only when b changes (tiny).
                pl.BlockSpec((1, D, Tp), lambda b, qb: (b, 0, 0)),
            ],
            out_specs=pl.BlockSpec((Qt, Lt_p, T),
                                   lambda b, qb: (b * QB + qb, 0, 0)),
        ),
        compiler_params=pltpu.CompilerParams(
            dimension_semantics=("parallel", "parallel"),
            vmem_limit_bytes=vmem_limit),
    )(test_c, proto)

    if Qp != Q or pad_lt:
        out = out.reshape(B, Qp, Lt_p, T)[:, :Q, :Lt, :].reshape(N, Lt, T)
    return out


# --------------------------------------------------------------------------
# Pure-JAX reference (transcription of the PyTorch forward)
# --------------------------------------------------------------------------
def _reference(test_reps, support_reps, support_targets):
    B = support_reps.shape[0]
    Q = test_reps.shape[0] // B
    t = jnp.mean(test_reps, axis=1)                                     # (N, Lt, D)
    sum_reps = jnp.einsum('bslt,bsld->btd', support_targets, support_reps)
    tag_count = jnp.sum(support_targets, axis=(1, 2))[..., None] + 0.0001
    proto = sum_reps / tag_count                                        # (B, T, D)
    proto = jnp.repeat(proto, Q, axis=0)                                # (N, T, D)
    return jnp.einsum('nld,ntd->nlt', t, proto)                         # (N, Lt, T)


if __name__ == "__main__":
    key = jax.random.PRNGKey(0)
    B, Q, S = 2, 4, 3          # batch, query_size, support_size
    Lt, Ls = 8, 8              # test_seq_len, support_seq_len
    D, T = 32, 5               # emb_dim, num_tags

    k1, k2, k3 = jax.random.split(key, 3)
    test_reps = jax.random.normal(k1, (B * Q, S, Lt, D), dtype=jnp.float32)
    support_reps = jax.random.normal(k2, (B, S, Ls, D), dtype=jnp.float32)
    labels = jax.random.randint(k3, (B, S, Ls), 0, T)
    support_targets = jax.nn.one_hot(labels, T, dtype=jnp.float32)
    test_output_mask = jnp.ones((B, Q, Lt), dtype=jnp.float32)      # unused
    support_output_mask = jnp.ones((B, S, Ls), dtype=jnp.float32)   # unused

    ref = _reference(test_reps, support_reps, support_targets)

    # Exact-arithmetic path (f32 operands): tight check against the reference.
    sim_f32 = prototype_similarity_scorer(
        test_reps, support_reps, test_output_mask, support_output_mask,
        support_targets, compute_dtype=jnp.float32)
    sim_f32 = jax.block_until_ready(sim_f32)
    assert sim_f32.shape == (B * Q, Lt, T)
    assert jnp.allclose(sim_f32, ref, atol=1e-3, rtol=1e-3), "f32 mismatch"

    # Production path (bf16 operands, f32 accumulation): loosened tolerance.
    sim_bf16 = prototype_similarity_scorer(
        test_reps, support_reps, test_output_mask, support_output_mask,
        support_targets)
    sim_bf16 = jax.block_until_ready(sim_bf16)
    assert sim_bf16.shape == (B * Q, Lt, T)
    assert jnp.allclose(sim_bf16, ref, atol=1e-1, rtol=2e-2), "bf16 mismatch"

    print("KERNEL_OK")
</pallas_src>

<mosaic_0001>
module attributes {stable_mosaic.version = 11 : i64} {
  func.func @_proto_kernel(%arg0: i32, %arg1: memref<1x3x8x32xf32, #tpu.memory_space<vmem>>, %arg2: memref<1x3x8x128xf32, #tpu.memory_space<vmem>>, %arg3: memref<1x32x128xf32, #tpu.memory_space<vmem>>) attributes {dimension_semantics = [#tpu.dimension_semantics<parallel>], iteration_bounds = array<i64: 2>, scalar_prefetch = 0 : i64, scratch_operands = 0 : i64, tpu.core_type = #tpu.core_type<tc>, window_params = [{transform_indices = @transform_0, window_bounds = array<i64: 1, 3, 8, 32>}, {transform_indices = @transform_1, window_bounds = array<i64: 1, 3, 8, 128>}, {transform_indices = @transform_2, window_bounds = array<i64: 1, 32, 128>}]} {
    %c0 = arith.constant 0 : index
    %c0_0 = arith.constant 0 : index
    %c0_1 = arith.constant 0 : index
    %c0_2 = arith.constant 0 : index
    %0 = vector.load %arg1[%c0, %c0_0, %c0_1, %c0_2] : memref<1x3x8x32xf32, #tpu.memory_space<vmem>>, vector<1x3x8x32xf32>
    %1 = vector.shape_cast %0 : vector<1x3x8x32xf32> to vector<3x8x32xf32>
    %c0_3 = arith.constant 0 : index
    %c0_4 = arith.constant 0 : index
    %c0_5 = arith.constant 0 : index
    %c0_6 = arith.constant 0 : index
    %2 = vector.load %arg2[%c0_3, %c0_4, %c0_5, %c0_6] : memref<1x3x8x128xf32, #tpu.memory_space<vmem>>, vector<1x3x8x128xf32>
    %3 = vector.shape_cast %2 : vector<1x3x8x128xf32> to vector<3x8x128xf32>
    %4 = vector.shape_cast %1 : vector<3x8x32xf32> to vector<24x32xf32>
    %5 = vector.shape_cast %3 : vector<3x8x128xf32> to vector<24x128xf32>
    %cst = arith.constant dense<0.000000e+00> : vector<32x128xf32>
    %6 = tpu.matmul %4, %5, %cst {dimension_numbers = #tpu.dot_dimension_numbers<[0], [0], [1], [1], [0, 1, 1, 1], [], []>} : vector<24x32xf32>, vector<24x128xf32>, vector<32x128xf32> -> vector<32x128xf32>
    %cst_7 = arith.constant dense<0.000000e+00> : vector<128xf32>
    %7 = vector.multi_reduction <add>, %5, %cst_7 [0] : vector<24x128xf32> to vector<128xf32>
    %8 = vector.shape_cast %7 : vector<128xf32> to vector<1x128xf32>
    %cst_8 = arith.constant 9.99999974E-5 : f32
    %9 = vector.broadcast %cst_8 : f32 to vector<1x128xf32>
    %10 = arith.addf %8, %9 : vector<1x128xf32>
    %11 = tpu.reciprocal %10 : vector<1x128xf32> -> vector<1x128xf32>
    %cst_9 = arith.constant 0.333333343 : f32
    %12 = vector.broadcast %cst_9 : f32 to vector<1x128xf32>
    %13 = arith.mulf %11, %12 : vector<1x128xf32>
    %14 = vector.broadcast %13 : vector<1x128xf32> to vector<32x128xf32>
    %15 = arith.mulf %6, %14 : vector<32x128xf32>
    %c0_10 = arith.constant 0 : index
    %c0_11 = arith.constant 0 : index
    %c0_12 = arith.constant 0 : index
    %16 = vector.load %arg3[%c0_10, %c0_11, %c0_12] : memref<1x32x128xf32, #tpu.memory_space<vmem>>, vector<1x32x128xf32>
    %17 = vector.shape_cast %16 : vector<1x32x128xf32> to vector<32x128xf32>
    %18 = vector.shape_cast %15 : vector<32x128xf32> to vector<1x32x128xf32>
    tpu.vector_store %arg3[%c0_10, %c0_11, %c0_12], %18 {strides = array<i32>} : memref<1x32x128xf32, #tpu.memory_space<vmem>>, vector<1x32x128xf32>,
    return
  }
  func.func @transform_0(%arg0: i32) -> (i32, i32, i32, i32) {
    %c0_i32 = arith.constant 0 : i32
    %c0_i32_0 = arith.constant 0 : i32
    %c0_i32_1 = arith.constant 0 : i32
    %c0_i32_2 = arith.constant 0 : i32
    return %arg0, %c0_i32, %c0_i32_0, %c0_i32_1 : i32, i32, i32, i32
  }
  func.func @transform_1(%arg0: i32) -> (i32, i32, i32, i32) {
    %c0_i32 = arith.constant 0 : i32
    %c0_i32_0 = arith.constant 0 : i32
    %c0_i32_1 = arith.constant 0 : i32
    %c0_i32_2 = arith.constant 0 : i32
    return %arg0, %c0_i32, %c0_i32_0, %c0_i32_1 : i32, i32, i32, i32
  }
  func.func @transform_2(%arg0: i32) -> (i32, i32, i32) {
    %c0_i32 = arith.constant 0 : i32
    %c0_i32_0 = arith.constant 0 : i32
    %c0_i32_1 = arith.constant 0 : i32
    return %arg0, %c0_i32, %c0_i32_0 : i32, i32, i32
  }
}

</mosaic_0001>

<bundles_post_ra>
// kernel: tpu_custom_call.1
= control target key start
LH: loop header
LB: loop body
LE: loop exit
PB: predicated region body
PF: predicated region fallthrough
CT: control target
= control target key end

     0   :  { %7 = vsyncpa [#allocation3], 0  ;;  %s829_s0 = inlined_call_operand.hbm [shape: f32[2,3,8,32], index: 0, kind: input, shape index: {}]   ;;  %s830_s1 = inlined_call_operand.hbm [shape: f32[2,3,8,128], index: 1, kind: input, shape index: {}]   ;;  %s831_s2 = inlined_call_operand.hbm [shape: f32[2,32,128], index: 2, kind: output, shape index: {}]  }
   0x1   :  { %9 = vsyncpa [#allocation3 + $0x1], 0 }
   0x2   :  { %10 = vsyncpa [#allocation6], 0 }
   0x3   :  { %12 = vsyncpa [#allocation6 + $0x1], 0 }
   0x4   :  { %13 = vsyncpa [#allocation4], 0 }
   0x5   :  { %15 = vsyncpa [#allocation4 + $0x1], 0  ;;  %s670_s9 = smov 0   ;;  %s672_s10 = smov 0  }
   0x6   :  { %s674_s11 = smov 0   ;;  %s676_s12 = smov 0  }
   0x7 LB: > { %s691_s13 = sadd.s32 4294967295, %s649_s12   ;;  %s430_s14 = sadd.s32 4294967294, %s649_s12   ;;  %s649_s12 = sphi %s676_s12, %s840_s12   ;;  %s645_s11 = sphi %s674_s11, %s839_s11   ;;  %s641_s10 = sphi %s672_s10, %s838_s10   ;;  %s637_s9 = sphi %s670_s9, %s837_s9  }
   0x8   : > { %s695_s15 = sadd.s32 1, %s649_s12   ;;  %s28_s16 = sadd.s32 1, %s645_s11 }
   0x9   : > { %s25_s17 = ssub.s32 %s649_s12, %s695_s15  ;;  %p35_p0 = scmp.ne.s32.totalorder %s645_s11, %s641_s10 }
   0xa   : > { %p26_p1 = scmp.eq.s32.totalorder %s25_s17, 0  ;;  %p36_p2 = scmp.eq.s32.totalorder %s649_s12, 0 }
   0xb   : > { %p41_p3 = scmp.ne.s32.totalorder %s641_s10, %s637_s9  ;;  %p42_p4 = scmp.eq.s32.totalorder %s691_s13, 0 }
   0xc   : > { %s707_s18 = scalar_select %p26_p1, %s645_s11, %s28_s16  }
   0xd   : > { %p37_p5 = por %p36_p2, %p35_p0  ;;  %p709_p6 = por %p42_p4, %p41_p3 }
   0xe   : > { %p91_p7 = scmp.eq.s32.totalorder %s691_s13, 1  ;;  %p97_p8 = scmp.eq.s32.totalorder %s430_s14, 1 }
   0xf   : > { %p432_p9 = scmp.ge.s32.totalorder %s649_s12, 2  ;;  %p478_p10 = scmp.lt.s32.totalorder %s649_s12, 2 }
  0x10   : > { %p716_p11 = por %p91_p7, %p35_p0  ;;  %p720_p12 = por %p97_p8, %p41_p3 }
  0x11   : > { %s725_s22 = sand.u32 1, %s645_s11   ;;  %s457_s23 = smul.u32 24, %s649_s12 }
  0x12   : > { %s456_s24 = smul.u32 24, %s725_s22  ;;  %p734_p13 = pnand %p478_p10, %p37_p5 }
  0x13   : > { %s126_s27 = scalar_lea.hbm %s829_s0, %s457_s23  ;;  %s118_s4 = scalar_lea.sflag [#allocation3], %s725_s22 }
  0x14   : > { %s127_s29 = sshll.u32 %s126_s27, 4  ;;  %s121_s30 = scalar_lea.vmem [#allocation2], %s456_s24  ;;  %s128_s29 = int_to_ptr.hbm [resolvable:$true] %s127_s29 }
  0x15   : > { %s129_s3 = sshll.u32 %s121_s30, 4  ;;  %s519_s5 = sshra.s32 %s128_s29, 4  ;;  %s130_s3 = int_to_ptr.vmem [resolvable:$true] %s129_s3  ;;  %s520_s5 = int_to_ptr.hbm [resolvable:$true] %s519_s5 }
  0x16   : > { %s521_s6 = scalar_lea.hbm %s520_s5, 24  ;;  %p523_p1 = pneg %p734_p13 }
  0x17   : > { %p522_p0 = scmp.ne.s32.totalorder %s520_s5, %s521_s6  ;;  %s526_s14 = scalar_lea.hbm %s829_s0, 48 }
  0x18   : > { %p527_p4 = scmp.lt.s32.totalorder %s520_s5, %s829_s0  ;;  %p528_p5 = scmp.lt.s32.totalorder %s526_s14, %s521_s6 }
  0x19   : > { %p524_p2 = pnand %p523_p1, %p522_p0 }
  0x1a   : > { %p529_p7 = por %p528_p5, %p527_p4 }
  0x1b   : > { %p525_p3 = pneg %p524_p2 }
  0x1d   : > { %p530_p8 = pnand %p529_p7, %p525_p3 }
  0x1f   : > { %533 = shalt.err (!%p530_p8)
}
  0x20   : > { %s651_s25 = smov 128   ;;  %s652_s26 = smov 8  }
  0x21   : > { %470 = dma.hbm_to_vmem [thread:$0]  (!%p734_p13), %s128_s29, 384, %s130_s3, %s118_s4, %s651_s25, %s651_s25, %s652_s26  }
  0x22   : > { %p435_p10 = scmp.ge.s32.totalorder %s649_s12, 1  ;;  %p159_p0 = scmp.lt.s32.totalorder %s649_s12, 3 }
  0x23   : > { %s148_s6 = scalar_lea.hbm %s830_s1, %s457_s23  ;;  %s143_s8 = scalar_lea.vmem [#allocation5], %s456_s24 }
  0x24   : > { %p756_p2 = pnand %p435_p10, %p159_p0  ;;  %s149_s7 = sshll.u32 %s148_s6, 4  ;;  %s150_s7 = int_to_ptr.hbm [resolvable:$true] %s149_s7 }
  0x25   : > { %s151_s14 = sshll.u32 %s143_s8, 4  ;;  %s140_s16 = scalar_lea.sflag [#allocation6], %s725_s22  ;;  %s152_s14 = int_to_ptr.vmem [resolvable:$true] %s151_s14 }
  0x26   : > { %s549_s17 = sshra.s32 %s150_s7, 4  ;;  %s556_s30 = scalar_lea.hbm %s830_s1, 48  ;;  %s550_s17 = int_to_ptr.hbm [resolvable:$true] %s549_s17 }
  0x27   : > { %s551_s29 = scalar_lea.hbm %s550_s17, 24  ;;  %p557_p7 = scmp.lt.s32.totalorder %s550_s17, %s830_s1 }
  0x28   : > { %p552_p3 = scmp.ne.s32.totalorder %s550_s17, %s551_s29  ;;  %p558_p8 = scmp.lt.s32.totalorder %s556_s30, %s551_s29 }
  0x2a   : > { %p554_p4 = pnand %p552_p3, %p523_p1  ;;  %p559_p10 = por %p558_p8, %p557_p7 }
  0x2c   : > { %p555_p5 = pneg %p554_p4 }
  0x2e   : > { %p560_p0 = pnand %p559_p10, %p555_p5 }
  0x30   : > { %563 = shalt.err (!%p560_p0)
}
  0x31   : > { %473 = dma.hbm_to_vmem [thread:$0]  (!%p734_p13), %s150_s7, 384, %s152_s14, %s140_s16, %s651_s25, %s651_s25, %s652_s26  }
  0x32   : > { %163 = sbr.rel (%p756_p2) target bundleno = 386 (0x182), region = 28  ;;  %s782_s22 = sand.u32 (!%p756_p2), 1, %s641_s10  }
  0x33   : > { %s460_s24 = smul.u32 (!%p756_p2), 24, %s782_s22  ;;  %s166_s6 = scalar_lea.sflag (!%p756_p2), [#allocation3], %s782_s22 }
  0x35   : > { %s169_s8 = scalar_lea.vmem (!%p756_p2), [#allocation2], %s460_s24 }
  0x37   : > { %624 = dma.done.wait (%p709_p6), %s166_s6, 384  }
  0x38   : > { %626 = vsyncadd (%p709_p6), %s166_s6, 4294966912  ;;  %s176_s28 = scalar_lea.sflag [#allocation6], %s782_s22  ;;  %s179_s25 = scalar_lea.vmem [#allocation5], %s460_s24 }
  0x39   : > { %628 = dma.done.wait (%p709_p6), %s176_s28, 384  }
  0x3a   : > { %630 = vsyncadd (%p709_p6), %s176_s28, 4294966912  ;;  %v206_v0 = vld [vmem:[%s169_s8] sm:$0xff]  ;;  %v210_v2 = vld [vmem:[%s179_s25 + $0x8] sm:$0xff]  ;;  %vm244_vm0 = vcmask 195584   ;;  %s436_s19 = sshll.u32 %s782_s22, 5  ;;  %s446_s27 = sshll.u32 %s691_s13, 5 }
  0x3b   : > { %212 = vxpose.xlu0.b32.start [1/3] (short) (narrow) %v206_v0, 32  ;;  %v211_v1 = vld [vmem:[%s179_s25 + $0x10] sm:$0xff]  ;;  %v209_v3 = vld [vmem:[%s179_s25] sm:$0xff]  ;;  %v207_v6 = vld [vmem:[%s169_s8 + $0x8] sm:$0xff]  ;;  %s205_s26 = scalar_lea.vmem [#allocation7], %s436_s19  ;;  %s330_s16 = scalar_lea.hbm %s831_s2, %s446_s27 }
  0x3c   : > { %270 = vmatpush.msra.mxu0 %v211_v1  ;;  %v286_v4 = vadd.f32 %v210_v2, %v209_v3  ;;  %447 = vmatpush.msra.mxu1 %v211_v1  ;;  %v208_v7 = vld [vmem:[%s169_s8 + $0x10] sm:$0xff]  ;;  %s331_s17 = sshll.u32 %s205_s26, 4  ;;  %s333_s29 = sshll.u32 %s330_s16, 4  ;;  %s332_s17 = int_to_ptr.vmem [resolvable:$true] %s331_s17  ;;  %s334_s29 = int_to_ptr.hbm [resolvable:$true] %s333_s29 }
  0x3d   : > { %448 = vmatpush.msra.mxu2 %v211_v1  ;;  %449 = vmatpush.msra.mxu3 %v211_v1  ;;  %s319_s3 = scalar_lea.sflag [#allocation4], %s782_s22  ;;  %s593_s4 = sshra.s32 %s334_s29, 4  ;;  %s594_s4 = int_to_ptr.hbm [resolvable:$true] %s593_s4 }
  0x3e   : > { %271 = vmatpush.msra.mxu0 %v210_v2  ;;  %v287_v5 = vadd.f32 %v286_v4, %v211_v1  ;;  %450 = vmatpush.msra.mxu1 %v210_v2  ;;  %s595_s30 = scalar_lea.hbm %s594_s4, 32  ;;  %s599_s5 = scalar_lea.hbm %s831_s2, 64 }
  0x3f   : > { %451 = vmatpush.msra.mxu2 %v210_v2  ;;  %452 = vmatpush.msra.mxu3 %v210_v2  ;;  %p596_p6 = scmp.ne.s32.totalorder %s594_s4, %s595_s30  ;;  %p600_p2 = scmp.lt.s32.totalorder %s594_s4, %s831_s2 }
  0x40   : > { %272 = vmatpush.msra.mxu0 %v209_v3  ;;  %453 = vmatpush.msra.mxu1 %v209_v3  ;;  %v288_v12 = vrot.slane %v287_v5, 4  ;;  %p601_p3 = scmp.lt.s32.totalorder %s599_s5, %s595_s30 }
  0x41   : > { %454 = vmatpush.msra.mxu2 %v209_v3  ;;  %455 = vmatpush.msra.mxu3 %v209_v3  ;;  %p597_p13 = pnand %p596_p6, %p716_p11 }
  0x42   : > { %v289_v13 = vadd.f32 %v288_v12, %v287_v5  ;;  %p602_p4 = por %p601_p3, %p600_p2 }
  0x43   : > { %213 = vxpose.xlu0.b32.cont [2/3] (short) (narrow) %v207_v6, 32  ;;  %p598_p1 = pneg %p597_p13 }
  0x44   : > { %v290_v14 = vrot.slane %v289_v13, 2 }
  0x45   : > { %p603_p5 = pnand %p602_p4, %p598_p1 }
  0x46   : > { %v291_v15 = vadd.f32 %v290_v14, %v289_v13 }
  0x48   : > { %v292_v16 = vrot.slane %v291_v15, 1 }
  0x4a   : > { %v293_v17 = vadd.f32 %v292_v16, %v291_v15 }
  0x4b   : > { %214 = vxpose.xlu0.b32.end [3/3] (short) (narrow) %v208_v7, 32 }
  0x4c   : > { %v294_v18 = vadd.f32 0.0001, %v293_v17 }
  0x4e   : > { %517 = vrcp.f32 %v294_v18  ;;  %vm300_vm1 = vweird.f32 %v294_v18  ;;  %v306_v23 = vand.u32 2147483648, %v294_v18  ;;  %v304_v25 = vand.u32 2147483647, %v294_v18 }
  0x50   : > { %v307_v26 = vor.u32 1.1754944e-38, %v306_v23  ;;  %vm305_vm4 = vcmp.eq.f32.partialorder %v304_v25, 8.507059e+37 }
  0x54   : > { %v518_v19 = vpop.eup %517 }
  0x55   : > { %v296_v20 = vmul.f32 %v518_v19, %v294_v18  ;;  %vm301_vm2 = vweird.f32 %v518_v19 }
  0x56   : > { %vm302_vm3 = vmor %vm300_vm1, %vm301_vm2 }
  0x57   : > { %v297_v21 = vsub.f32 1.0, %v296_v20 }
  0x59   : > { %v298_v22 = vmul.f32 %v518_v19, %v297_v21 }
  0x5b   : > { %v299_v24 = vadd.f32 %v518_v19, %v298_v22 }
  0x5d   : > { %v303_v27 = vsel %vm302_vm3, %v518_v19, %v299_v24 }
  0x5e   : > { %v308_v28 = vsel %vm305_vm4, %v307_v26, %v303_v27 }
  0x5f   : > { %v309_v29 = vmul.f32 0.33333334, %v308_v28 }
  0xdf   : > { %v228_v8 = vpop.trf.xlu0 }
  0xe0   : > { %437 = vmatmul.msk.f32.vlgmr.msra.gmra.mxu0 %vm244_vm0, %v228_v8 }
  0xe7   : > { %v229_v9 = vpop.trf.xlu0 }
  0xe8   : > { %438 = vmatmul.msk.f32.vlgmr.msra.gmra.mxu1 %vm244_vm0, %v229_v9 }
  0xef   : > { %v230_v10 = vpop.trf.xlu0 }
  0xf0   : > { %439 = vmatmul.msk.f32.vlgmr.msra.gmra.mxu2 %vm244_vm0, %v230_v10 }
  0xf7   : > { %v231_v11 = vpop.trf.xlu0 }
  0xf8   : > { %440 = vmatmul.msk.f32.vlgmr.msra.gmra.mxu3 %vm244_vm0, %v231_v11 }
 0x15d   : > { %v274_v30 = vpop.f32.mrf.mxu0 }
 0x15e   : > { %v310_v31 = vmul.f32 %v309_v29, %v274_v30 }
 0x160   : > { %314 = vst [vmem:[%s205_s26] sm:$0xff] %v310_v31 }
 0x165   : > { %v277_v32 = vpop.f32.mrf.mxu1 }
 0x166   : > { %v311_v33 = vmul.f32 %v309_v29, %v277_v32 }
 0x168   : > { %315 = vst [vmem:[%s205_s26 + $0x8] sm:$0xff] %v311_v33 }
 0x173   : > { %v280_v34 = vpop.f32.mrf.mxu2 }
 0x174   : > { %v312_v35 = vmul.f32 %v309_v29, %v280_v34 }
 0x176   : > { %316 = vst [vmem:[%s205_s26 + $0x10] sm:$0xff] %v312_v35 }
 0x17b   : > { %v283_v36 = vpop.f32.mrf.mxu3 }
 0x17c   : > { %v313_v37 = vmul.f32 %v309_v29, %v283_v36 }
 0x17e   : > { %317 = vst [vmem:[%s205_s26 + $0x18] sm:$0xff] %v313_v37 }
 0x17f   : > { %606 = shalt.err (!%p603_p5)
}
 0x180   : > { %s653_s22 = smov 128   ;;  %s654_s8 = smov 8  }
 0x181   : > { %465 = dma.vmem_to_hbm [thread:$0]  (%p716_p11), %s332_s17, 512, %s334_s29, %s319_s3, %s653_s22, %s653_s22, %s654_s8  }
 0x182 PF: > { %s348_s28 = sand.u32 1, %s637_s9   ;;  %p475_p7 = pnand %p432_p9, %p720_p12 }
 0x183   : > { %s349_s25 = scalar_lea.sflag [#allocation4], %s348_s28 }
 0x184   : > { %p476_p8 = pneg %p475_p7 }
 0x186   : > { %632 = dma.done.wait (%p476_p8), %s349_s25, 512  }
 0x187   : > { %634 = vsyncadd (%p476_p8), %s349_s25, 4294966784  ;;  %p18_p10 = scmp.ge.s32.totalorder %s695_s15, 4   ;;  %s837_s9 = smov %s641_s10 }
 0x188   : > { %s838_s10 = smov %s645_s11  ;;  %s839_s11 = smov %s707_s18 }
 0x189   : > { %s840_s12 = smov %s695_s15  ;;  %20 = sbr.rel (!%p18_p10) target bundleno = 7 (0x7), region = 86 }
 0x18e   :  { %355 = vsyncpa [#allocation3], 1 }
 0x18f   :  { %357 = vsyncpa [#allocation3 + $0x1], 1 }
 0x190   :  { %358 = vsyncpa [#allocation6], 1 }
 0x191   :  { %360 = vsyncpa [#allocation6 + $0x1], 1 }
 0x192   :  { %361 = vsyncpa [#allocation4], 1 }
 0x193   :  { %363 = vsyncpa [#allocation4 + $0x1], 1 }

</bundles_post_ra>
